<compile_context>
chip_gen: v5e
topology: v5e:2x2
jax: 0.10.0
libtpu: 0.0.40
codegen_flags: <defaults>
</compile_context>

<pallas_src>
import jax
import jax.numpy as jnp
from jax.experimental import pallas as pl
from jax.experimental.pallas import tpu as pltpu

KSIZE = 4  # layer1 kernel size for J=0


def _bilinear_l96_kernel(p_ref, x_ref, o_ref):
    # p_ref: (16,) SMEM packed, pre-folded parameters:
    #   p[0:4]  = (w2*w3[0]) * W1[0,:]
    #   p[4:8]  =              W1[1,:]
    #   p[8:12] =      w3[1] * W1[2,:]
    #   p[12]   = (w2*w3[0]) * b1[0]
    #   p[13]   =              b1[1]
    #   p[14]   =      w3[1] * b1[2] + b3
    #   p[15]   = padding
    # x_ref : (TN, K) VMEM, o_ref: (TN, K) VMEM
    x0 = x_ref[...]
    K = x0.shape[1]

    # Hoisted circular taps: position k of tap t reads x[(k + t - 2) mod K],
    # i.e. lane roll by shift = 2 - t (jnp.roll convention). Only 3 XLU rolls;
    # tap t=2 is the identity.
    x_p2 = pltpu.roll(x0, shift=2, axis=1)        # tap t = 0
    x_p1 = pltpu.roll(x0, shift=1, axis=1)        # tap t = 1
    x_m1 = pltpu.roll(x0, shift=K - 1, axis=1)    # tap t = 3  (shift -1)
    taps = (x_p2, x_p1, x0, x_m1)

    # Hoist all scalar (SMEM) parameter reads once; loop below is fully unrolled.
    a = [p_ref[t] for t in range(KSIZE)]          # s * W1[0,:]
    b = [p_ref[4 + t] for t in range(KSIZE)]      # W1[1,:]
    c = [p_ref[8 + t] for t in range(KSIZE)]      # w3[1] * W1[2,:]

    # Start accumulators from the first tap product (no full_like broadcasts).
    y0 = a[0] * taps[0]
    y1 = b[0] * taps[0]
    y2 = c[0] * taps[0]
    for t in range(1, KSIZE):
        y0 = y0 + a[t] * taps[t]
        y1 = y1 + b[t] * taps[t]
        y2 = y2 + c[t] * taps[t]
    y0 = y0 + p_ref[12]
    y1 = y1 + p_ref[13]

    o_ref[...] = y0 * y1 + y2 + p_ref[14]


def _pick_batch_tile(N, K, target_bytes=4 << 20):
    """Sublane tile: multiple of 8 that divides N, ~target_bytes per input tile,
    preferring >=2 grid steps so megacore grid sharding has work to split."""
    if N <= 8:
        return N
    target_rows = max(8, target_bytes // (K * 4))
    cap = min(target_rows, N // 2 if N >= 16 else N)
    tn = cap - cap % 8
    while tn >= 8:
        if N % tn == 0:
            return tn
        tn -= 8
    return N  # small / irregular batch: single full-slab tile


def bilinear_conv_net_l96(x, w1, b1, w2, w3, b3, *, batch_tile=None):
    """x: (N, 1, K) float32  ->  (N, 1, K) float32."""
    assert x.ndim == 3 and x.shape[1] == 1, "J=0: single channel expected"
    N, _, K = x.shape

    tn = _pick_batch_tile(N, K) if batch_tile is None else batch_tile
    assert N % tn == 0, "batch_tile must divide N"
    assert tn == N or tn % 8 == 0, "batch_tile must be a multiple of 8 (or == N)"

    x2d = x[:, 0, :].astype(jnp.float32)  # (N, K)

    # Fold scalar weights once in the wrapper (O(1) scalar work in XLA).
    w1 = w1.reshape(3, KSIZE).astype(jnp.float32)
    b1 = b1.reshape(3).astype(jnp.float32)
    w2 = w2.reshape(-1).astype(jnp.float32)
    w3 = w3.reshape(-1).astype(jnp.float32)
    b3 = b3.reshape(-1).astype(jnp.float32)
    s = w2[0] * w3[0]
    params = jnp.concatenate([
        s * w1[0],                                  # 4
        w1[1],                                      # 4
        w3[1] * w1[2],                              # 4
        (s * b1[0]).reshape(1),                     # 1
        b1[1].reshape(1),                           # 1
        (w3[1] * b1[2] + b3[0]).reshape(1),         # 1
        jnp.zeros((1,), jnp.float32),               # pad -> 16
    ])

    smem = pltpu.MemorySpace.SMEM

    out2d = pl.pallas_call(
        _bilinear_l96_kernel,
        out_shape=jax.ShapeDtypeStruct((N, K), jnp.float32),
        grid=(N // tn,),
        in_specs=[
            pl.BlockSpec((16,), lambda i: (0,), memory_space=smem),
            pl.BlockSpec((tn, K), lambda i: (i, 0)),
        ],
        out_specs=pl.BlockSpec((tn, K), lambda i: (i, 0)),
        compiler_params=pltpu.CompilerParams(
            dimension_semantics=("parallel",),
            vmem_limit_bytes=64 << 20,
        ),
    )(params, x2d)

    return out2d[:, None, :]


def reference_forward(x, w1, b1, w2, w3, b3):
    """Pure-JAX reference of the PyTorch forward (J=0, circular padding)."""
    xs = x[:, 0, :]
    w1 = w1.reshape(3, KSIZE)
    ys = []
    for c in range(3):
        yc = jnp.full_like(xs, b1[c])
        for t in range(KSIZE):
            yc = yc + w1[c, t] * jnp.roll(xs, 2 - t, axis=-1)
        ys.append(yc)
    z = w2.reshape(-1)[0] * ys[0] * ys[1]
    out = w3.reshape(-1)[0] * z + w3.reshape(-1)[1] * ys[2] + b3.reshape(-1)[0]
    return out[:, None, :]


if __name__ == "__main__":
    key = jax.random.PRNGKey(0)
    k_x, k_w1, k_b1, k_w2, k_w3, k_b3 = jax.random.split(key, 6)

    N, K = 16, 128  # batch (2 grid steps of 8 rows), L96 ring size (lane axis)

    # Deterministic synthetic parameters (module __init__ shapes, J=0):
    #   layer1.weight (3,1,4), layer1.bias (3,), layer2.weight (1,1,1),
    #   layer3.weight (1,2,1), layer3.bias (1,)
    w1 = jax.random.normal(k_w1, (3, 4), dtype=jnp.float32) * 0.5
    b1 = jax.random.normal(k_b1, (3,), dtype=jnp.float32) * 0.1
    w2 = jax.random.normal(k_w2, (1,), dtype=jnp.float32)
    w3 = jax.random.normal(k_w3, (2,), dtype=jnp.float32)
    b3 = jax.random.normal(k_b3, (1,), dtype=jnp.float32)

    x = jax.random.normal(k_x, (N, 1, K), dtype=jnp.float32)

    out = bilinear_conv_net_l96(x, w1, b1, w2, w3, b3)
    out = jax.block_until_ready(out)

    ref = reference_forward(x, w1, b1, w2, w3, b3)
    assert out.shape == (N, 1, K)
    assert jnp.allclose(out, ref, rtol=1e-5, atol=1e-5), "mismatch vs reference"

    print("KERNEL_OK")
</pallas_src>

<mosaic_0001>
module attributes {stable_mosaic.version = 11 : i64} {
  func.func @_bilinear_l96_kernel(%arg0: i32, %arg1: memref<16xf32, #tpu.memory_space<smem>>, %arg2: memref<8x128xf32, #tpu.memory_space<vmem>>, %arg3: memref<8x128xf32, #tpu.memory_space<vmem>>) attributes {dimension_semantics = [#tpu.dimension_semantics<parallel>], iteration_bounds = array<i64: 2>, scalar_prefetch = 0 : i64, scratch_operands = 0 : i64, tpu.core_type = #tpu.core_type<tc>, window_params = [{transform_indices = @transform_0, window_bounds = array<i64: 16>}, {transform_indices = @transform_1, window_bounds = array<i64: 8, 128>}, {transform_indices = @transform_2, window_bounds = array<i64: 8, 128>}]} {
    %c0 = arith.constant 0 : index
    %c0_0 = arith.constant 0 : index
    %0 = vector.load %arg2[%c0, %c0_0] : memref<8x128xf32, #tpu.memory_space<vmem>>, vector<8x128xf32>
    %c2_i32 = arith.constant 2 : i32
    %1 = tpu.dynamic_rotate %0 by %c2_i32 dim 1 : vector<8x128xf32>, i32 -> vector<8x128xf32>
    %c1_i32 = arith.constant 1 : i32
    %2 = tpu.dynamic_rotate %0 by %c1_i32 dim 1 : vector<8x128xf32>, i32 -> vector<8x128xf32>
    %c127_i32 = arith.constant 127 : i32
    %3 = tpu.dynamic_rotate %0 by %c127_i32 dim 1 : vector<8x128xf32>, i32 -> vector<8x128xf32>
    %c0_1 = arith.constant 0 : index
    %4 = memref.load %arg1[%c0_1] : memref<16xf32, #tpu.memory_space<smem>>
    %c1 = arith.constant 1 : index
    %5 = memref.load %arg1[%c1] : memref<16xf32, #tpu.memory_space<smem>>
    %c2 = arith.constant 2 : index
    %6 = memref.load %arg1[%c2] : memref<16xf32, #tpu.memory_space<smem>>
    %c3 = arith.constant 3 : index
    %7 = memref.load %arg1[%c3] : memref<16xf32, #tpu.memory_space<smem>>
    %c4 = arith.constant 4 : index
    %8 = memref.load %arg1[%c4] : memref<16xf32, #tpu.memory_space<smem>>
    %c5 = arith.constant 5 : index
    %9 = memref.load %arg1[%c5] : memref<16xf32, #tpu.memory_space<smem>>
    %c6 = arith.constant 6 : index
    %10 = memref.load %arg1[%c6] : memref<16xf32, #tpu.memory_space<smem>>
    %c7 = arith.constant 7 : index
    %11 = memref.load %arg1[%c7] : memref<16xf32, #tpu.memory_space<smem>>
    %c8 = arith.constant 8 : index
    %12 = memref.load %arg1[%c8] : memref<16xf32, #tpu.memory_space<smem>>
    %c9 = arith.constant 9 : index
    %13 = memref.load %arg1[%c9] : memref<16xf32, #tpu.memory_space<smem>>
    %c10 = arith.constant 10 : index
    %14 = memref.load %arg1[%c10] : memref<16xf32, #tpu.memory_space<smem>>
    %c11 = arith.constant 11 : index
    %15 = memref.load %arg1[%c11] : memref<16xf32, #tpu.memory_space<smem>>
    %16 = vector.broadcast %4 : f32 to vector<8x128xf32>
    %17 = arith.mulf %16, %1 : vector<8x128xf32>
    %18 = vector.broadcast %8 : f32 to vector<8x128xf32>
    %19 = arith.mulf %18, %1 : vector<8x128xf32>
    %20 = vector.broadcast %12 : f32 to vector<8x128xf32>
    %21 = arith.mulf %20, %1 : vector<8x128xf32>
    %22 = vector.broadcast %5 : f32 to vector<8x128xf32>
    %23 = arith.mulf %22, %2 : vector<8x128xf32>
    %24 = arith.addf %17, %23 : vector<8x128xf32>
    %25 = vector.broadcast %9 : f32 to vector<8x128xf32>
    %26 = arith.mulf %25, %2 : vector<8x128xf32>
    %27 = arith.addf %19, %26 : vector<8x128xf32>
    %28 = vector.broadcast %13 : f32 to vector<8x128xf32>
    %29 = arith.mulf %28, %2 : vector<8x128xf32>
    %30 = arith.addf %21, %29 : vector<8x128xf32>
    %31 = vector.broadcast %6 : f32 to vector<8x128xf32>
    %32 = arith.mulf %31, %0 : vector<8x128xf32>
    %33 = arith.addf %24, %32 : vector<8x128xf32>
    %34 = vector.broadcast %10 : f32 to vector<8x128xf32>
    %35 = arith.mulf %34, %0 : vector<8x128xf32>
    %36 = arith.addf %27, %35 : vector<8x128xf32>
    %37 = vector.broadcast %14 : f32 to vector<8x128xf32>
    %38 = arith.mulf %37, %0 : vector<8x128xf32>
    %39 = arith.addf %30, %38 : vector<8x128xf32>
    %40 = vector.broadcast %7 : f32 to vector<8x128xf32>
    %41 = arith.mulf %40, %3 : vector<8x128xf32>
    %42 = arith.addf %33, %41 : vector<8x128xf32>
    %43 = vector.broadcast %11 : f32 to vector<8x128xf32>
    %44 = arith.mulf %43, %3 : vector<8x128xf32>
    %45 = arith.addf %36, %44 : vector<8x128xf32>
    %46 = vector.broadcast %15 : f32 to vector<8x128xf32>
    %47 = arith.mulf %46, %3 : vector<8x128xf32>
    %48 = arith.addf %39, %47 : vector<8x128xf32>
    %c12 = arith.constant 12 : index
    %49 = memref.load %arg1[%c12] : memref<16xf32, #tpu.memory_space<smem>>
    %50 = vector.broadcast %49 : f32 to vector<8x128xf32>
    %51 = arith.addf %42, %50 : vector<8x128xf32>
    %c13 = arith.constant 13 : index
    %52 = memref.load %arg1[%c13] : memref<16xf32, #tpu.memory_space<smem>>
    %53 = vector.broadcast %52 : f32 to vector<8x128xf32>
    %54 = arith.addf %45, %53 : vector<8x128xf32>
    %55 = arith.mulf %51, %54 : vector<8x128xf32>
    %56 = arith.addf %55, %48 : vector<8x128xf32>
    %c14 = arith.constant 14 : index
    %57 = memref.load %arg1[%c14] : memref<16xf32, #tpu.memory_space<smem>>
    %58 = vector.broadcast %57 : f32 to vector<8x128xf32>
    %59 = arith.addf %56, %58 : vector<8x128xf32>
    %c0_2 = arith.constant 0 : index
    %c0_3 = arith.constant 0 : index
    %60 = vector.load %arg3[%c0_2, %c0_3] : memref<8x128xf32, #tpu.memory_space<vmem>>, vector<8x128xf32>
    tpu.vector_store %arg3[%c0_2, %c0_3], %59 {strides = array<i32>} : memref<8x128xf32, #tpu.memory_space<vmem>>, vector<8x128xf32>,
    return
  }
  func.func @transform_0(%arg0: i32) -> i32 {
    %c0_i32 = arith.constant 0 : i32
    %c0_i32_0 = arith.constant 0 : i32
    return %c0_i32 : i32
  }
  func.func @transform_1(%arg0: i32) -> (i32, i32) {
    %c0_i32 = arith.constant 0 : i32
    %c0_i32_0 = arith.constant 0 : i32
    return %arg0, %c0_i32 : i32, i32
  }
  func.func @transform_2(%arg0: i32) -> (i32, i32) {
    %c0_i32 = arith.constant 0 : i32
    %c0_i32_0 = arith.constant 0 : i32
    return %arg0, %c0_i32 : i32, i32
  }
}

</mosaic_0001>

<bundles_post_ra>
// kernel: tpu_custom_call.1
= control target key start
LH: loop header
LB: loop body
LE: loop exit
PB: predicated region body
PF: predicated region fallthrough
CT: control target
= control target key end

     0   :  { %7 = vsyncpa [#allocation5], 0  ;;  %s715_s0 = inlined_call_operand.hbm [shape: f32[16], index: 0, kind: input, shape index: {}]   ;;  %s716_s1 = inlined_call_operand.hbm [shape: f32[16,128], index: 1, kind: input, shape index: {}]   ;;  %s717_s2 = inlined_call_operand.hbm [shape: f32[16,128], index: 2, kind: output, shape index: {}]  }
   0x1   :  { %8 = vsyncpa [#allocation3], 0 }
   0x2   :  { %10 = vsyncpa [#allocation3 + $0x1], 0 }
   0x3   :  { %11 = vsyncpa [#allocation4], 0 }
   0x4   :  { %13 = vsyncpa [#allocation4 + $0x1], 0  ;;  %s561_s9 = smov 0   ;;  %s563_s10 = smov 0  }
   0x5   :  { %s565_s11 = smov 0   ;;  %s567_s12 = smov 0  }
   0x6 LB: > { %s582_s13 = sadd.s32 4294967295, %s540_s12   ;;  %s337_s14 = sadd.s32 4294967294, %s540_s12   ;;  %s540_s12 = sphi %s567_s12, %s727_s12   ;;  %s536_s11 = sphi %s565_s11, %s726_s11   ;;  %s532_s10 = sphi %s563_s10, %s725_s10   ;;  %s528_s9 = sphi %s561_s9, %s724_s9  }
   0x7   : > { %p60_p0 = scmp.ne.s32.totalorder %s532_s10, %s528_s9  ;;  %p61_p1 = scmp.eq.s32.totalorder %s582_s13, 0 }
   0x8   : > { %p84_p2 = scmp.eq.s32.totalorder %s582_s13, 1  ;;  %p90_p3 = scmp.eq.s32.totalorder %s337_s14, 1 }
   0x9   : > { %p591_p4 = por %p61_p1, %p60_p0  ;;  %p338_p5 = scmp.ge.s32.totalorder %s540_s12, 1 }
   0xa   : > { %p596_p6 = por %p90_p3, %p60_p0  ;;  %p97_p7 = scmp.lt.s32.totalorder %s540_s12, 3 }
   0xb   : > { %s109_s19 = sshll.u32 %s715_s0, 4  ;;  %s612_s21 = sadd.s32 1, %s540_s12   ;;  %s110_s19 = int_to_ptr.hbm [resolvable:$true] %s109_s19 }
   0xc   : > { %p604_p8 = pnand %p338_p5, %p97_p7  ;;  %s44_s22 = ssub.s32 %s540_s12, %s612_s21 }
   0xd   : > { %p45_p12 = scmp.eq.s32.totalorder %s44_s22, 0  ;;  %s47_s23 = sadd.s32 1, %s536_s11 }
   0xe   : > { %p373_p10 = pneg %p604_p8  ;;  %p54_p13 = scmp.ne.s32.totalorder %s536_s11, %s532_s10 }
   0xf   : > { %s542_s24 = smov [#allocation2]   ;;  %p55_p0 = scmp.eq.s32.totalorder %s540_s12, 0 }
  0x10   : > { %p374_p11 = pnand %p373_p10, %p61_p1  ;;  %p627_p3 = por %p84_p2, %p54_p13 }
  0x11   : > { %s622_s25 = scalar_select %p45_p12, %s536_s11, %s47_s23  }
  0x12   : > { %376 = dma.hbm_to_smem (!%p374_p11), %s110_s19, 16, %s542_s24, [#allocation5]  }
  0x13   : > { %s120_s27 = sand.u32 1, %s536_s11   ;;  %p56_p5 = por %p55_p0, %p54_p13 }
  0x14   : > { %p386_p7 = scmp.lt.s32.totalorder %s540_s12, 2  ;;  %s341_s28 = sshll.u32 %s120_s27, 3 }
  0x15   : > { %s342_s29 = sshll.u32 %s540_s12, 3  ;;  %s124_s6 = scalar_lea.vmem [#allocation6], %s341_s28 }
  0x16   : > { %s128_s4 = scalar_lea.hbm %s716_s1, %s342_s29  ;;  %s132_s7 = sshll.u32 %s124_s6, 4  ;;  %s133_s7 = int_to_ptr.vmem [resolvable:$true] %s132_s7 }
  0x17   : > { %s130_s5 = sshll.u32 %s128_s4, 4  ;;  %p637_p10 = pnand %p386_p7, %p56_p5  ;;  %s131_s5 = int_to_ptr.hbm [resolvable:$true] %s130_s5 }
  0x18   : > { %s121_s14 = scalar_lea.sflag [#allocation3], %s120_s27  ;;  %s440_s17 = sshra.s32 %s131_s5, 4  ;;  %s441_s17 = int_to_ptr.hbm [resolvable:$true] %s440_s17 }
  0x19   : > { %s442_s18 = scalar_lea.hbm %s441_s17, 8  ;;  %p444_p11 = pneg %p637_p10 }
  0x1a   : > { %p443_p2 = scmp.ne.s32.totalorder %s441_s17, %s442_s18  ;;  %s447_s23 = scalar_lea.hbm %s716_s1, 16 }
  0x1b   : > { %p448_p0 = scmp.lt.s32.totalorder %s441_s17, %s716_s1  ;;  %p449_p5 = scmp.lt.s32.totalorder %s447_s23, %s442_s18 }
  0x1c   : > { %p445_p12 = pnand %p444_p11, %p443_p2 }
  0x1d   : > { %p450_p7 = por %p449_p5, %p448_p0 }
  0x1e   : > { %p446_p13 = pneg %p445_p12 }
  0x20   : > { %p451_p9 = pnand %p450_p7, %p446_p13 }
  0x22   : > { %454 = shalt.err (!%p451_p9)
}
  0x23   : > { %380 = dma.hbm_to_vmem [thread:$0]  (!%p637_p10), %s131_s5, 128, %s133_s7, %s121_s14  }
  0x24   : > { %141 = sbr.rel (%p604_p8) target bundleno = 191 (0xbf), region = 28 }
  0x29   : > { %515 = dma.done.wait (%p61_p1), [#allocation5], 16  }
  0x2a   : > { %517 = vsyncadd (%p61_p1), [#allocation5], 4294967280  ;;  %s658_s27 = sand.u32 1, %s532_s10  }
  0x2b   : > { %s345_s29 = sshll.u32 %s658_s27, 3  ;;  %s149_s30 = scalar_lea.sflag [#allocation3], %s658_s27 }
  0x2c   : > { %s152_s3 = scalar_lea.vmem [#allocation6], %s345_s29 }
  0x2d   : > { %519 = dma.done.wait (%p591_p4), %s149_s30, 128  }
  0x2e   : > { %521 = vsyncadd (%p591_p4), %s149_s30, 4294967168 }
  0x2f   : > { %158 = sfence }
  0x30   : > { %v175_v0 = vld [vmem:[%s152_s3] sm:$0xff]  ;;  %s543_s20 = smov 2   ;;  %s544_s4 = smov 127  }
  0x31   : > { %176 = vrot.lane.b32.xlu0 %v175_v0, %s543_s20  ;;  %180 = vrot.lane.b32.xlu1 %v175_v0, %s544_s4  ;;  %s545_s5 = smov 1   ;;  %s182_s6 = sld [smem:[#allocation2]] }
  0x32   : > { %s350_s7 = sld [smem:[#allocation2 + $0x4]]  ;;  %s362_s4 = sshll.u32 %s582_s13, 3 }
  0x33   : > { %s354_s8 = sld [smem:[#allocation2 + $0x8]]  ;;  %s240_s13 = scalar_lea.sflag [#allocation4], %s658_s27 }
  0x34   : > { %s347_s14 = sld [smem:[#allocation2 + $0x1]] }
  0x35   : > { %s351_s17 = sld [smem:[#allocation2 + $0x5]] }
  0x36   : > { %s355_s18 = sld [smem:[#allocation2 + $0x9]] }
  0x37   : > { %s348_s19 = sld [smem:[#allocation2 + $0x2]]  ;;  %v194_v2 = vstv %s182_s6 }
  0x38   : > { %s349_s22 = sld [smem:[#allocation2 + $0x3]]  ;;  %v196_v3 = vstv %s350_s7  ;;  %s250_s7 = scalar_lea.hbm %s717_s2, %s362_s4 }
  0x39   : > { %178 = vrot.lane.b32.xlu0 %v175_v0, %s545_s5  ;;  %s352_s23 = sld [smem:[#allocation2 + $0x6]]  ;;  %v198_v6 = vstv %s354_s8  ;;  %s174_s8 = scalar_lea.vmem [#allocation7], %s345_s29 }
  0x3a   : > { %s668_s24 = sld [smem:[#allocation2 + $0x7]]  ;;  %v200_v7 = vstv %s347_s14  ;;  %s252_s14 = sshll.u32 %s174_s8, 4  ;;  %s253_s14 = int_to_ptr.vmem [resolvable:$true] %s252_s14 }
  0x3b   : > { %s356_s15 = sld [smem:[#allocation2 + $0xa]]  ;;  %v203_v8 = vstv %s351_s17  ;;  %s254_s17 = sshll.u32 %s250_s7, 4  ;;  %s255_s17 = int_to_ptr.hbm [resolvable:$true] %s254_s17 }
  0x3c   : > { %s670_s28 = sld [smem:[#allocation2 + $0xb]]  ;;  %v206_v9 = vstv %s355_s18  ;;  %s484_s18 = sshra.s32 %s255_s17, 4  ;;  %s485_s18 = int_to_ptr.hbm [resolvable:$true] %s484_s18 }
  0x3d   : > { %v209_v4 = vstv %s348_s19  ;;  %s672_s30 = sld [smem:[#allocation2 + $0xc]]  ;;  %s486_s19 = scalar_lea.hbm %s485_s18, 8 }
  0x3e   : > { %s674_s3 = sld [smem:[#allocation2 + $0xd]]  ;;  %v218_v11 = vstv %s349_s22  ;;  %v210_v17 = vmul.f32 %v209_v4, %v175_v0  ;;  %p487_p1 = scmp.ne.s32.totalorder %s485_s18, %s486_s19 }
  0x3f   : > { %v212_v5 = vstv %s352_s23  ;;  %s360_s20 = sld [smem:[#allocation2 + $0xe]]  ;;  %p491_p9 = scmp.lt.s32.totalorder %s485_s18, %s717_s2 }
  0x40   : > { %v221_v12 = vstv %s668_s24  ;;  %v213_v18 = vmul.f32 %v212_v5, %v175_v0  ;;  %p488_p4 = pnand %p487_p1, %p627_p3  ;;  %s490_s24 = scalar_lea.hbm %s717_s2, 16 }
  0x41   : > { %v215_v10 = vstv %s356_s15  ;;  %p492_p10 = scmp.lt.s32.totalorder %s490_s24, %s486_s19 }
  0x42   : > { %v216_v23 = vmul.f32 %v215_v10, %v175_v0  ;;  %v224_v29 = vstv %s670_s28  ;;  %p489_p8 = pneg %p488_p4 }
  0x43   : > { %v228_v32 = vstv %s672_s30  ;;  %p493_p2 = por %p492_p10, %p491_p9 }
  0x44   : > { %v231_v33 = vstv %s674_s3 }
  0x45   : > { %v236_v42 = vstv %s360_s20  ;;  %p494_p11 = pnand %p493_p2, %p489_p8 }
  0xa3   : > { %v177_v1 = vpop.permute.xlu0 %176  ;;  %v181_v13 = vpop.permute.xlu1 %180 }
  0xa4   : > { %v195_v14 = vmul.f32 %v194_v2, %v177_v1  ;;  %v197_v15 = vmul.f32 %v196_v3, %v177_v1  ;;  %v199_v19 = vmul.f32 %v198_v6, %v177_v1  ;;  %v219_v24 = vmul.f32 %v218_v11, %v181_v13 }
  0xa5   : > { %v222_v28 = vmul.f32 %v221_v12, %v181_v13  ;;  %v225_v37 = vmul.f32 %v224_v29, %v181_v13 }
  0xab   : > { %v179_v16 = vpop.permute.xlu0 %178 }
  0xac   : > { %v201_v20 = vmul.f32 %v200_v7, %v179_v16  ;;  %v204_v21 = vmul.f32 %v203_v8, %v179_v16  ;;  %v207_v22 = vmul.f32 %v206_v9, %v179_v16 }
  0xae   : > { %v202_v25 = vadd.f32 %v201_v20, %v195_v14  ;;  %v205_v26 = vadd.f32 %v204_v21, %v197_v15  ;;  %v208_v27 = vadd.f32 %v207_v22, %v199_v19 }
  0xb0   : > { %v211_v30 = vadd.f32 %v210_v17, %v202_v25  ;;  %v214_v31 = vadd.f32 %v213_v18, %v205_v26  ;;  %v217_v34 = vadd.f32 %v216_v23, %v208_v27 }
  0xb2   : > { %v220_v35 = vadd.f32 %v219_v24, %v211_v30  ;;  %v223_v36 = vadd.f32 %v222_v28, %v214_v31  ;;  %v226_v40 = vadd.f32 %v225_v37, %v217_v34 }
  0xb4   : > { %v229_v38 = vadd.f32 %v228_v32, %v220_v35  ;;  %v232_v39 = vadd.f32 %v231_v33, %v223_v36 }
  0xb6   : > { %v233_v41 = vmul.f32 %v232_v39, %v229_v38 }
  0xb8   : > { %v234_v43 = vadd.f32 %v233_v41, %v226_v40 }
  0xba   : > { %v237_v44 = vadd.f32 %v236_v42, %v234_v43 }
  0xbc   : > { %238 = vst [vmem:[%s174_s8] sm:$0xff] %v237_v44 }
  0xbd   : > { %497 = shalt.err (!%p494_p11)
}
  0xbe   : > { %371 = dma.vmem_to_hbm [thread:$0]  (%p627_p3), %s253_s14, 128, %s255_s17, %s240_s13  }
  0xbf PF: > { %s266_s27 = sand.u32 1, %s528_s9   ;;  %p723_p12 = scmp.ge.s32.totalorder %s540_s12, 2 }
  0xc0   : > { %s267_s28 = scalar_lea.sflag [#allocation4], %s266_s27 }
  0xc1   : > { %p382_p13 = pnand %p723_p12, %p596_p6 }
  0xc3   : > { %p383_p0 = pneg %p382_p13 }
  0xc5   : > { %523 = dma.done.wait (%p383_p0), %s267_s28, 128  }
  0xc6   : > { %525 = vsyncadd (%p383_p0), %s267_s28, 4294967168  ;;  %p16_p5 = scmp.ge.s32.totalorder %s612_s21, 4   ;;  %s724_s9 = smov %s532_s10 }
  0xc7   : > { %s725_s10 = smov %s536_s11  ;;  %s726_s11 = smov %s622_s25 }
  0xc8   : > { %s727_s12 = smov %s612_s21  ;;  %18 = sbr.rel (!%p16_p5) target bundleno = 6 (0x6), region = 78 }
  0xcd   :  { %273 = vsyncpa [#allocation3], 1 }
  0xce   :  { %275 = vsyncpa [#allocation3 + $0x1], 1 }
  0xcf   :  { %276 = vsyncpa [#allocation4], 1 }
  0xd0   :  { %278 = vsyncpa [#allocation4 + $0x1], 1 }
  0xd1   :  { %279 = vsyncpa [#allocation5], 1 }
  0xd2   :  { %281 = vsyncpa [#allocation5 + $0x1], 1 }

</bundles_post_ra>
